<compile_context>
chip_gen: v7x
topology: tpu7x:2x2x1
jax: 0.10.0
libtpu: 0.0.40
codegen_flags: <defaults>
</compile_context>

<pallas_src>
import math
import functools

import jax
import jax.numpy as jnp
from jax.experimental import pallas as pl
from jax.experimental.pallas import tpu as pltpu


def time_embedding_kernel(t_ref, consts_ref, w1_ref, w2_ref, out_ref, *, half_dim):
    # t_ref:      (tile, 1) f32
    # consts_ref: (4, n_channels) f32
    #   row 0: freqs duplicated [f, f] (zero-padded to n_channels)
    #   row 1: phase [0..0, pi/2..pi/2] (zero-padded)
    #   row 2: b1, row 3: b2
    # w1_ref:     (2*half_dim, n_channels) bf16
    # w2_ref:     (n_channels, n_channels) bf16
    # out_ref:    (tile, n_channels) f32
    two_h = 2 * half_dim
    t = t_ref[...]                               # (tile, 1)
    consts = consts_ref[...]                     # (4, n_channels)

    freqs = consts[0:1, :two_h]                  # (1, two_h)
    phase = consts[1:2, :two_h]                  # (1, two_h)
    b1 = consts[2:3, :]                          # (1, n_channels)
    b2 = consts[3:4, :]                          # (1, n_channels)

    # sin on first half, cos on second half via +pi/2 phase (matches torch.cat order)
    emb = jnp.sin(t * freqs + phase)             # (tile, two_h) f32

    # lin1 + Swish (bf16 MXU operands, f32 accumulation / activation)
    h = jnp.dot(emb.astype(w1_ref.dtype), w1_ref[...],
                preferred_element_type=jnp.float32) + b1
    h = h * jax.nn.sigmoid(h)

    # lin2
    out = jnp.dot(h.astype(w2_ref.dtype), w2_ref[...],
                  preferred_element_type=jnp.float32) + b2
    out_ref[...] = out.astype(out_ref.dtype)


def _pick_batch_tile(B, n_channels, target):
    """Multiple-of-8 tile bounded by VMEM, >=2 blocks (v7x), dividing B if possible."""
    # Double-buffered f32 output tile budget; conservative across v5e/v6e/v7x.
    vmem_budget = 16 * 1024 * 1024
    max_tile = max(8, (vmem_budget // (2 * n_channels * 4)) // 8 * 8)
    tile = min(target, max_tile)
    if B >= 16:
        # keep at least 2 grid blocks so v7x can shard across its 2 TensorCores
        tile = min(tile, max(8, (B // 2) // 8 * 8))
    tile = max(8, tile // 8 * 8)
    # prefer an exact divisor of B: no padding, no post-call slice
    if B % tile != 0 and B % 8 == 0:
        for cand in range(tile, 7, -8):
            if B % cand == 0:
                tile = cand
                break
    return tile


def time_embedding(t, w1, b1, w2, b2, n_channels, *, batch_tile=4096,
                   weight_dtype=jnp.bfloat16):
    """t: (B,) int/float; w1:(C//4,C), b1:(C,), w2:(C,C), b2:(C,); returns (B,C) f32."""
    half_dim = n_channels // 8
    assert half_dim >= 2, "n_channels must be >= 16 (half_dim - 1 divisor)"
    two_h = 2 * half_dim
    B = t.shape[0]

    # Host-side constants (hoisted out of the kernel), packed into one array.
    emb_const = math.log(10000.0) / (half_dim - 1)
    freqs_half = jnp.exp(jnp.arange(half_dim, dtype=jnp.float32) * (-emb_const))
    freqs_row = jnp.zeros((n_channels,), jnp.float32).at[:two_h].set(
        jnp.concatenate([freqs_half, freqs_half]))
    phase_row = jnp.zeros((n_channels,), jnp.float32).at[half_dim:two_h].set(
        math.pi / 2.0)
    consts = jnp.stack([freqs_row, phase_row,
                        b1.astype(jnp.float32), b2.astype(jnp.float32)])  # (4, C)

    w1c = w1.astype(weight_dtype)
    w2c = w2.astype(weight_dtype)
    t2d = t.astype(jnp.float32).reshape(B, 1)

    kernel = functools.partial(time_embedding_kernel, half_dim=half_dim)

    if B <= batch_tile:
        # Tiny/medium workload: single invocation, no grid, everything in VMEM.
        return pl.pallas_call(
            kernel,
            out_shape=jax.ShapeDtypeStruct((B, n_channels), jnp.float32),
        )(t2d, consts, w1c, w2c)

    # Large-batch path: tile over B, weights/consts VMEM-resident (constant
    # index_map), batch axis "parallel" so v7x can shard it across its 2 TCs.
    tile = _pick_batch_tile(B, n_channels, batch_tile)
    n_blocks = pl.cdiv(B, tile)
    B_pad = n_blocks * tile
    if B_pad != B:
        t2d = jnp.pad(t2d, ((0, B_pad - B), (0, 0)))

    out = pl.pallas_call(
        kernel,
        out_shape=jax.ShapeDtypeStruct((B_pad, n_channels), jnp.float32),
        grid=(n_blocks,),
        in_specs=[
            pl.BlockSpec((tile, 1), lambda i: (i, 0)),
            pl.BlockSpec((4, n_channels), lambda i: (0, 0)),
            pl.BlockSpec(w1c.shape, lambda i: (0, 0)),
            pl.BlockSpec(w2c.shape, lambda i: (0, 0)),
        ],
        out_specs=pl.BlockSpec((tile, n_channels), lambda i: (i, 0)),
        compiler_params=pltpu.CompilerParams(
            dimension_semantics=("parallel",)),
    )(t2d, consts, w1c, w2c)
    return out if B_pad == B else out[:B]


def _reference(t, w1, b1, w2, b2, n_channels):
    """Pure-JAX f32 reference mirroring the PyTorch forward."""
    half_dim = n_channels // 8
    emb_const = math.log(10000.0) / (half_dim - 1)
    freqs = jnp.exp(jnp.arange(half_dim, dtype=jnp.float32) * -emb_const)
    arg = t.astype(jnp.float32)[:, None] * freqs[None, :]
    emb = jnp.concatenate([jnp.sin(arg), jnp.cos(arg)], axis=1)
    h = emb @ w1 + b1
    h = h * jax.nn.sigmoid(h)
    return h @ w2 + b2


if __name__ == "__main__":
    n_channels = 128          # time_channel; half_dim = 16, lin1 in_features = 32
    batch = 8

    key = jax.random.PRNGKey(0)
    k_t, k_w1, k_b1, k_w2, k_b2 = jax.random.split(key, 5)

    # integer timesteps t, shape (batch,)
    t = jax.random.randint(k_t, (batch,), 0, 1000)

    # PyTorch nn.Linear default init: U(-1/sqrt(in), 1/sqrt(in)); stored as (in, out)
    in1 = n_channels // 4
    bound1 = 1.0 / math.sqrt(in1)
    w1 = jax.random.uniform(k_w1, (in1, n_channels), jnp.float32, -bound1, bound1)
    b1 = jax.random.uniform(k_b1, (n_channels,), jnp.float32, -bound1, bound1)

    bound2 = 1.0 / math.sqrt(n_channels)
    w2 = jax.random.uniform(k_w2, (n_channels, n_channels), jnp.float32, -bound2, bound2)
    b2 = jax.random.uniform(k_b2, (n_channels,), jnp.float32, -bound2, bound2)

    # bf16 MXU weights loosen the tolerance vs. the pure-f32 reference.
    tol = dict(atol=2e-2, rtol=2e-2)

    # Small-batch (no-grid) path — the shape the module is normally called with.
    out = time_embedding(t, w1, b1, w2, b2, n_channels)
    out = jax.block_until_ready(out)
    ref = _reference(t, w1, b1, w2, b2, n_channels)
    assert out.shape == (batch, n_channels)
    assert jnp.allclose(out, ref, **tol), "mismatch vs reference (small B)"

    # Exercise the batch-tiled ("parallel" grid) path as well (small total size).
    big_batch = 256
    t_big = jax.random.randint(jax.random.PRNGKey(1), (big_batch,), 0, 1000)
    out_big = time_embedding(t_big, w1, b1, w2, b2, n_channels, batch_tile=64)
    out_big = jax.block_until_ready(out_big)
    ref_big = _reference(t_big, w1, b1, w2, b2, n_channels)
    assert out_big.shape == (big_batch, n_channels)
    assert jnp.allclose(out_big, ref_big, **tol), "mismatch vs reference (tiled B)"

    print("KERNEL_OK")
</pallas_src>

<mosaic_0001>
module attributes {stable_mosaic.version = 11 : i64} {
  func.func @time_embedding_kernel(%arg0: memref<8x1xf32, #tpu.memory_space<vmem>>, %arg1: memref<4x128xf32, #tpu.memory_space<vmem>>, %arg2: memref<32x128xbf16, #tpu.memory_space<vmem>>, %arg3: memref<128x128xbf16, #tpu.memory_space<vmem>>, %arg4: memref<8x128xf32, #tpu.memory_space<vmem>>) attributes {dimension_semantics = [], scalar_prefetch = 0 : i64, scratch_operands = 0 : i64, tpu.core_type = #tpu.core_type<tc>} {
    %c0 = arith.constant 0 : index
    %c0_0 = arith.constant 0 : index
    %0 = vector.load %arg0[%c0, %c0_0] : memref<8x1xf32, #tpu.memory_space<vmem>>, vector<8x1xf32>
    %c0_1 = arith.constant 0 : index
    %c0_2 = arith.constant 0 : index
    %1 = vector.load %arg1[%c0_1, %c0_2] : memref<4x128xf32, #tpu.memory_space<vmem>>, vector<4x128xf32>
    %2 = vector.extract_strided_slice %1 {offsets = [0, 0], sizes = [1, 32], strides = [1, 1]} : vector<4x128xf32> to vector<1x32xf32>
    %3 = vector.extract_strided_slice %1 {offsets = [1, 0], sizes = [1, 32], strides = [1, 1]} : vector<4x128xf32> to vector<1x32xf32>
    %4 = vector.extract_strided_slice %1 {offsets = [2, 0], sizes = [1, 128], strides = [1, 1]} : vector<4x128xf32> to vector<1x128xf32>
    %5 = vector.extract_strided_slice %1 {offsets = [3, 0], sizes = [1, 128], strides = [1, 1]} : vector<4x128xf32> to vector<1x128xf32>
    %6 = vector.broadcast %0 : vector<8x1xf32> to vector<8x32xf32>
    %7 = vector.broadcast %2 : vector<1x32xf32> to vector<8x32xf32>
    %8 = arith.mulf %6, %7 : vector<8x32xf32>
    %9 = vector.broadcast %3 : vector<1x32xf32> to vector<8x32xf32>
    %10 = arith.addf %8, %9 : vector<8x32xf32>
    %11 = math.sin %10 : vector<8x32xf32>
    %12 = arith.truncf %11 : vector<8x32xf32> to vector<8x32xbf16>
    %c0_3 = arith.constant 0 : index
    %c0_4 = arith.constant 0 : index
    %13 = vector.load %arg2[%c0_3, %c0_4] : memref<32x128xbf16, #tpu.memory_space<vmem>>, vector<32x128xbf16>
    %cst = arith.constant dense<0.000000e+00> : vector<8x128xf32>
    %14 = tpu.matmul %12, %13, %cst {dimension_numbers = #tpu.dot_dimension_numbers<[1], [0], [0], [1], [0, 0, 1, 1], [], []>} : vector<8x32xbf16>, vector<32x128xbf16>, vector<8x128xf32> -> vector<8x128xf32>
    %15 = vector.broadcast %4 : vector<1x128xf32> to vector<8x128xf32>
    %16 = arith.addf %14, %15 : vector<8x128xf32>
    %17 = arith.negf %16 : vector<8x128xf32>
    %18 = math.exp %17 : vector<8x128xf32>
    %cst_5 = arith.constant 1.000000e+00 : f32
    %19 = vector.broadcast %cst_5 : f32 to vector<8x128xf32>
    %20 = arith.addf %19, %18 : vector<8x128xf32>
    %21 = arith.divf %19, %20 : vector<8x128xf32>
    %22 = arith.mulf %16, %21 : vector<8x128xf32>
    %23 = arith.truncf %22 : vector<8x128xf32> to vector<8x128xbf16>
    %c0_6 = arith.constant 0 : index
    %c0_7 = arith.constant 0 : index
    %24 = vector.load %arg3[%c0_6, %c0_7] : memref<128x128xbf16, #tpu.memory_space<vmem>>, vector<128x128xbf16>
    %cst_8 = arith.constant dense<0.000000e+00> : vector<8x128xf32>
    %25 = tpu.matmul %23, %24, %cst_8 {dimension_numbers = #tpu.dot_dimension_numbers<[1], [0], [0], [1], [0, 0, 1, 1], [], []>} : vector<8x128xbf16>, vector<128x128xbf16>, vector<8x128xf32> -> vector<8x128xf32>
    %26 = vector.broadcast %5 : vector<1x128xf32> to vector<8x128xf32>
    %27 = arith.addf %25, %26 : vector<8x128xf32>
    %c0_9 = arith.constant 0 : index
    %c0_10 = arith.constant 0 : index
    %28 = vector.load %arg4[%c0_9, %c0_10] : memref<8x128xf32, #tpu.memory_space<vmem>>, vector<8x128xf32>
    tpu.vector_store %arg4[%c0_9, %c0_10], %27 {strides = array<i32>} : memref<8x128xf32, #tpu.memory_space<vmem>>, vector<8x128xf32>,
    return
  }
}

</mosaic_0001>

<bundles_post_ra>
// kernel: tpu_custom_call.1
= control target key start
LH: loop header
LB: loop body
LE: loop exit
PB: predicated region body
PF: predicated region fallthrough
CT: control target
= control target key end

     0   :  { %9 = vsyncpa [#allocation3], 0  ;;  %s665_s0 = inlined_call_operand.vmem [shape: f32[8,1], index: 0, kind: input, shape index: {}]   ;;  %s666_s1 = inlined_call_operand.hbm [shape: f32[4,128], index: 1, kind: input, shape index: {}]   ;;  %s667_s2 = inlined_call_operand.vmem [shape: bf16[32,128], index: 2, kind: input, shape index: {}]   ;;  %s668_s3 = inlined_call_operand.hbm [shape: bf16[128,128], index: 3, kind: input, shape index: {}]   ;;  %s669_s4 = inlined_call_operand.hbm [shape: f32[8,128], index: 4, kind: output, shape index: {}]  }
   0x1   :  { %10 = vsyncpa [#allocation6], 0 }
   0x2   :  { %11 = vsyncpa [#allocation4], 0  ;;  %s529_s15 = smov [#allocation2]   ;;  %s530_s17 = smov [#allocation5]  }
   0x3   :  { %s20_s16 = sshll.u32 %s529_s15, 4  ;;  %s31_s18 = sshll.u32 %s530_s17, 4  ;;  %s21_s16 = int_to_ptr.vmem [resolvable:$true] %s20_s16  ;;  %s568_s18 = int_to_ptr.vmem [resolvable:$true] %s31_s18 }
   0x4   :  { %s457_s21 = scalar_lea.hbm %s666_s1, 64 }
   0x5   :  { %p458_p0 = scmp.ne.s32.totalorder %s666_s1, %s457_s21  ;;  %p461_p1 = scmp.lt.u32.totalorder %s457_s21, %s666_s1 }
   0x7   :  { %p463_p2 = pnand %p461_p1, %p458_p0 }
   0x9   :  { %466 = shalt.err (!%p463_p2)
}
   0xa   :  { %s467_s26 = scalar_lea.vmem %s21_s16, 64  ;;  %p472_p4 = scmp.lt.s32.totalorder %s21_s16, %s21_s16 }
   0xb   :  { %p468_p3 = scmp.ne.s32.totalorder %s21_s16, %s467_s26  ;;  %p473_p5 = scmp.lt.s32.totalorder %s467_s26, %s467_s26 }
   0xd   :  { %p474_p6 = por %p473_p5, %p472_p4 }
   0xf   :  { %p475_p7 = pnand %p474_p6, %p468_p3 }
  0x11   :  { %478 = shalt.err (!%p475_p7)
}
  0x12   :  { %23 = dma.hbm_to_vmem [thread:$0]  %s666_s1, 64, %s21_s16, [#allocation3]  }
  0x13   :  { %s479_s5 = scalar_lea.hbm %s668_s3, 1024 }
  0x14   :  { %p480_p8 = scmp.ne.s32.totalorder %s668_s3, %s479_s5  ;;  %p483_p9 = scmp.lt.u32.totalorder %s479_s5, %s668_s3 }
  0x16   :  { %p485_p10 = pnand %p483_p9, %p480_p8 }
  0x18   :  { %488 = shalt.err (!%p485_p10)
}
  0x19   :  { %s489_s10 = scalar_lea.vmem %s568_s18, 1024  ;;  %p494_p12 = scmp.lt.s32.totalorder %s568_s18, %s568_s18 }
  0x1a   :  { %p490_p11 = scmp.ne.s32.totalorder %s568_s18, %s489_s10  ;;  %p495_p13 = scmp.lt.s32.totalorder %s489_s10, %s489_s10 }
  0x1c   :  { %p496_p0 = por %p495_p13, %p494_p12 }
  0x1e   :  { %p497_p1 = pnand %p496_p0, %p490_p11 }
  0x20   :  { %500 = shalt.err (!%p497_p1)
}
  0x21   :  { %s531_s1 = smov 64   ;;  %s532_s11 = smov 4  }
  0x22   :  { %37 = dma.hbm_to_vmem [thread:$0]  %s668_s3, 1024, %s568_s18, [#allocation6], %s531_s1, %s531_s1, %s532_s11  }
  0x23   :  { %523 = dma.done.wait [#allocation3], 64  }
  0x24   :  { %524 = vsyncadd [#allocation3], 4294967232 }
  0x25   :  { %525 = dma.done.wait [#allocation6], 1024  }
  0x26   :  { %526 = vsyncadd [#allocation6], 4294966272  ;;  %v533_v0 = vmov 0   ;;  %v45_v1 = vld [vmem:[%s665_s0] sm:$0xff]  ;;  %v534_v3 = vmov 0.0   ;;  %vm535_vm0 = vmmov 0   ;;  %v52_v5 = vlaneseq }
  0x27   :  { %438 = vset.pattern.permute.xlu0 %v533_v0  ;;  %v439_v2 = vld [vmem:[%s667_s2] sm:$0xff]   ;;  %392 = vmatprep.subr.bf16.mxu0 %v534_v3  ;;  %v440_v4 = vld [vmem:[%s667_s2 + $0x8] sm:$0xff]   ;;  %v616_v8 = vld [vmem:[#allocation2] sm:$0xf]  ;;  %v536_v25 = vmov 683565275  }
  0x28   :  { %49 = vperm.xlu0 %438, %v45_v1   ;;  %396 = vmatprep.mubr.msk.bf16.mxu0 %vm535_vm0, %v534_v3  ;;  %v613_v6 = vshrl.u32 %v52_v5, 7  ;;  %v537_v27 = vmov 2475754826   ;;  %v538_v30 = vmov 2131351028   ;;  %vm187_vm14 = vcmask 261120  }
  0x29   :  { %393 = vmatpush3.bf16.msra.mxu0 %v439_v2  ;;  %400 = vmatprep.subr.bf16.mxu1 %v534_v3  ;;  %v539_v33 = vmov 2102212464   ;;  %v540_v36 = vmov 920167782   ;;  %v541_v39 = vmov 1326507024  }
  0x2a   :  { %394 = vmatprep.subr.bf16.mxu0 %v534_v3  ;;  %416 = vmatprep.mubr.msk.bf16.mxu1 %vm535_vm0, %v534_v3  ;;  %v54_v7 = vsub.s32 0, %v613_v6  ;;  %v59_v9 = vsub.s32 1, %v613_v6  ;;  %s542_s0 = smov [#allocation7]  }
  0x2b   :  { %s354_s2 = sshll.u32 %s542_s0, 4  ;;  %s355_s2 = int_to_ptr.vmem [resolvable:$true] %s354_s2 }
  0x2c   :  { %v55_v10 = vrot.slane %v616_v8, %v54_v7  ;;  %v60_v11 = vrot.slane %v616_v8, %v59_v9  ;;  %s501_s19 = scalar_lea.vmem %s355_s2, 128  ;;  %p506_p3 = scmp.lt.s32.totalorder %s355_s2, %s355_s2 }
  0x2d   :  { %395 = vmatpush3.bf16.msra.mxu0 %v440_v4  ;;  %p502_p2 = scmp.ne.s32.totalorder %s355_s2, %s501_s19  ;;  %p507_p4 = scmp.lt.s32.totalorder %s501_s19, %s501_s19 }
  0x2f   :  { %p508_p5 = por %p507_p4, %p506_p3 }
  0x31   :  { %p509_p6 = pnand %p508_p5, %p502_p2 }
  0xa7   :  { %v50_v12 = vpop.permute.xlu0 %49 }
  0xa8   :  { %v56_v13 = vmul.f32 %v55_v10, %v50_v12 }
  0xaa   :  { %v621_v14 = vadd.f32 %v60_v11, %v56_v13 }
  0xac   :  { %v65_v15 = vand.u32 2139095040, %v621_v14  ;;  %v62_v19 = vand.u32 2147483647, %v621_v14  ;;  %vm64_vm8 = vcmp.lt.s32.totalorder %v621_v14, 0  ;;  %vm154_vm13 = vweird.f32 %v621_v14 }
  0xae   :  { %v66_v16 = vshrl.u32 %v65_v15, 23  ;;  %v69_v22 = vand.u32 8388607, %v62_v19  ;;  %vm63_vm9 = vcmp.le.f32.partialorder %v62_v19, 0.7853982 }
  0xb0   :  { %v364_v17 = vadd.s32 4294967169, %v66_v16  ;;  %v70_v41 = vor.u32 8388608, %v69_v22 }
  0xb2   :  { %v72_v18 = vadd.s32 1, %v364_v17  ;;  %v110_v55 = vshll.u32 %v70_v41, 8 }
  0xb4   :  { %vm73_vm1 = vcmp.gt.s32.totalorder %v72_v18, 0 }
  0xb5   :  { %v74_v20 = vsel %vm73_vm1, %v72_v18, 0 }
  0xb6   :  { %v76_v21 = vand.u32 31, %v74_v20  ;;  %v75_v24 = vshrl.u32 %v74_v20, 5 }
  0xb8   :  { %v77_v23 = vsub.s32 32, %v76_v21  ;;  %v79_v26 = vshll.u32 %v536_v25, %v76_v21  ;;  %v82_v28 = vshll.u32 %v537_v27, %v76_v21  ;;  %v85_v32 = vshll.u32 %v538_v30, %v76_v21 }
  0xb9   :  { %v88_v35 = vshll.u32 %v539_v33, %v76_v21  ;;  %v91_v38 = vshll.u32 %v540_v36, %v76_v21  ;;  %vm94_vm2 = vcmp.lt.s32.totalorder %v75_v24, 1  ;;  %vm97_vm3 = vcmp.lt.s32.totalorder %v75_v24, 4 }
  0xba   :  { %v80_v29 = vshrl.u32 %v537_v27, %v77_v23  ;;  %v83_v31 = vshrl.u32 %v538_v30, %v77_v23  ;;  %v86_v34 = vshrl.u32 %v539_v33, %v77_v23  ;;  %v89_v37 = vshrl.u32 %v540_v36, %v77_v23 }
  0xbb   :  { %v92_v40 = vshrl.u32 %v541_v39, %v77_v23  ;;  %v78_v50 = vshrl.u32 %v536_v25, %v77_v23  ;;  %vm96_vm4 = vcmp.lt.s32.totalorder %v75_v24, 3  ;;  %vm95_vm5 = vcmp.lt.s32.totalorder %v75_v24, 2 }
  0xbc   :  { %v81_v42 = vor.u32 %v80_v29, %v79_v26  ;;  %v84_v43 = vor.u32 %v83_v31, %v82_v28  ;;  %v87_v44 = vor.u32 %v86_v34, %v85_v32  ;;  %v90_v45 = vor.u32 %v89_v37, %v88_v35 }
  0xbd   :  { %v93_v46 = vor.u32 %v92_v40, %v91_v38 }
  0xbe   :  { %v99_v47 = vsel %vm97_vm3, %v87_v44, 2102212464  ;;  %v102_v48 = vsel %vm94_vm2, %v81_v42, %v84_v43  ;;  %v106_v49 = vsel %vm94_vm2, %v84_v43, %v87_v44  ;;  %v103_v51 = vsel %vm97_vm3, %v90_v45, 920167782 }
  0xbf   :  { %v107_v52 = vsel %vm97_vm3, %v93_v46, 1326507024  ;;  %v104_v53 = vsel %vm96_vm4, %v87_v44, %v103_v51  ;;  %v98_v56 = vsel %vm94_vm2, %v78_v50, %v81_v42  ;;  %v100_v57 = vsel %vm96_vm4, %v84_v43, %v99_v47  ;;  %v441_v47 = vld [vmem:[#allocation5] sm:$0xff]   ;;  %v444_v50 = vld [vmem:[#allocation5 + $0x18] sm:$0xff]   ;;  %v446_v51 = vld [vmem:[#allocation5 + $0x28] sm:$0xff]  }
  0xc0   :  { %v108_v54 = vsel %vm96_vm4, %v90_v45, %v107_v52  ;;  %v105_v58 = vsel %vm95_vm5, %v102_v48, %v104_v53  ;;  %v101_v0 = vsel %vm95_vm5, %v98_v56, %v100_v57  ;;  %401 = vmatpush3.bf16.msra.mxu1 %v441_v47  ;;  %v442_v48 = vld [vmem:[#allocation5 + $0x8] sm:$0xff]   ;;  %v447_v52 = vld [vmem:[#allocation5 + $0x30] sm:$0xff]   ;;  %v448_v53 = vld [vmem:[#allocation5 + $0x38] sm:$0xff]  }
  0xc1   :  { %v109_v59 = vsel %vm95_vm5, %v106_v49, %v108_v54  ;;  %v630_v62 = vmul.u32.u64.low %v110_v55, %v105_v58  ;;  %v631_v63 = vmul.u32.u64.high %v110_v55, %v105_v58, %v630_v62  ;;  %v117_v2 = vmul.u32 %v110_v55, %v101_v0  ;;  %402 = vmatprep.subr.bf16.mxu1 %v534_v3  ;;  %v443_v49 = vld [vmem:[#allocation5 + $0x10] sm:$0xff]  }
  0xc2   :  { %v627_v60 = vmul.u32.u64.low %v110_v55, %v109_v59  ;;  %v628_v61 = vmul.u32.u64.high %v110_v55, %v109_v59, %v627_v60  ;;  %v173_v54 = vsub.s32 2, %v613_v6 }
  0xc3   :  { %v120_v1 = vadd.s32 1, %v631_v63 }
  0xc4   :  { %vm119_vm6 = vc.u32 %v628_v61, %v630_v62  ;;  %v118_v18 = vadd.s32 %v630_v62, %v628_v61  ;;  %403 = vmatpush3.bf16.msra.mxu1 %v442_v48  ;;  %v174_v55 = vrot.slane %v616_v8, %v173_v54 }
  0xc5   :  { %v121_v4 = vsel %vm119_vm6, %v120_v1, %v631_v63  ;;  %404 = vmatprep.subr.bf16.mxu1 %v534_v3 }
  0xc6   :  { %v122_v5 = vadd.s32 %v121_v4, %v117_v2 }
  0xc8   :  { %v123_v7 = vadd.s32 536870912, %v122_v5  ;;  %405 = vmatpush3.bf16.msra.mxu1 %v443_v49 }
  0xc9   :  { %406 = vmatprep.subr.bf16.mxu1 %v534_v3 }
  0xca   :  { %v124_v9 = vshrl.u32 %v123_v7, 30 }
  0xcc   :  { %v125_v10 = vshll.u32 %v124_v9, 30  ;;  %v148_v31 = vsub.s32 4, %v124_v9  ;;  %407 = vmatpush3.bf16.msra.mxu1 %v444_v50 }
  0xcd   :  { %408 = vmatprep.subr.bf16.mxu1 %v534_v3 }
  0xce   :  { %v126_v11 = vsub.s32 %v122_v5, %v125_v10  ;;  %v149_v34 = vsel %vm64_vm8, %v148_v31, %v124_v9 }
  0xcf   :  { %v151_v36 = vsel %vm63_vm9, 0, %v149_v34 }
  0xd0   :  { %v128_v12 = vsub.s32 0, %v126_v11  ;;  %v155_v37 = vadd.s32 3, %v151_v36 }
  0xd2   :  { %v365_v13 = vmin.u32 %v128_v12, %v126_v11  ;;  %v156_v38 = vand.u32 3, %v155_v37 }
  0xd4   :  { %v130_v15 = vclz %v365_v13  ;;  %vm161_vm10 = vcmp.eq.s32.totalorder %v156_v38, 2  ;;  %vm158_vm11 = vcmp.eq.s32.totalorder %v156_v38, 0  ;;  %vm157_vm12 = vcmp.lt.s32.totalorder %v156_v38, 2 }
  0xd6   :  { %v366_v16 = vadd.s32 4294967294, %v130_v15 }
  0xd8   :  { %vm367_vm7 = vcmp.lt.s32.totalorder %v366_v16, 0 }
  0xd9   :  { %v133_v17 = vsel %vm367_vm7, 0, %v366_v16 }
  0xda   :  { %v134_v20 = vsub.s32 32, %v133_v17  ;;  %v138_v21 = vsub.s32 4294967266, %v133_v17  ;;  %v135_v22 = vshll.u32 %v126_v11, %v133_v17 }
  0xdc   :  { %v136_v23 = vshrl.u32 %v118_v18, %v134_v20  ;;  %v139_v24 = vadd.s32 127, %v138_v21 }
  0xde   :  { %v137_v25 = vor.u32 %v136_v23, %v135_v22  ;;  %v140_v26 = vshll.u32 %v139_v24, 23 }
  0xe0   :  { %v141_v27 = vor.u32 4788187, %v140_v26  ;;  %v144_v29 = vcvt.s32.f32 %v137_v25 }
  0xe2   :  { %v142_v28 = vand.u32 2147483647, %v141_v27 }
  0xe4   :  { %v145_v30 = vmul.f32 %v144_v29, %v142_v28 }
  0xe6   :  { %v146_v32 = vxor.u32 2147483648, %v145_v30 }
  0xe8   :  { %v147_v33 = vsel %vm64_vm8, %v146_v32, %v145_v30 }
  0xe9   :  { %v150_v35 = vsel %vm63_vm9, %v621_v14, %v147_v33  ;;  %v445_v14 = vld [vmem:[#allocation5 + $0x20] sm:$0xff]  }
  0xea   :  { %449 = vcosq.f32 %v150_v35  ;;  %409 = vmatpush3.bf16.msra.mxu1 %v445_v14 }
  0xeb   :  { %451 = vsinq.f32 %v150_v35  ;;  %410 = vmatprep.subr.bf16.mxu1 %v534_v3 }
  0xee   :  { %411 = vmatpush3.bf16.msra.mxu1 %v446_v51 }
  0xef   :  { %412 = vmatprep.subr.bf16.mxu1 %v534_v3 }
  0xf2   :  { %413 = vmatpush3.bf16.msra.mxu1 %v447_v52 }
  0xf3   :  { %414 = vmatprep.subr.bf16.mxu1 %v534_v3  ;;  %v257_v3 = vsub.s32 3, %v613_v6 }
  0xf4   :  { %v450_v39 = vpop.eup %449 }
  0xf5   :  { %v452_v40 = vpop.eup %451  ;;  %v162_v41 = vxor.u32 2147483648, %v450_v39  ;;  %v258_v4 = vrot.slane %v616_v8, %v257_v3 }
  0xf6   :  { %v159_v42 = vxor.u32 2147483648, %v452_v40  ;;  %415 = vmatpush3.bf16.msra.mxu1 %v448_v53 }
  0xf7   :  { %v163_v43 = vsel %vm161_vm10, %v162_v41, %v452_v40 }
  0xf8   :  { %v160_v44 = vsel %vm158_vm11, %v450_v39, %v159_v42 }
  0xf9   :  { %v164_v19 = vsel %vm157_vm12, %v160_v44, %v163_v43 }
  0xfa   :  { %v165_v45 = vsel %vm154_vm13, nan, %v164_v19 }
  0xfb   :  { %v166_v46 = vpack.c.bf16 %v165_v45, %v165_v45 }
  0xfd   :  { %397 = vmatmul.mubr.msk.bf16.vlgmr.msra.gmra.mrb[0].mxu0 %vm187_vm14, %v166_v46 }
 0x1d0   :  { %v225_v56 = vpop.f32.mrb[0].mxu0 }
 0x1d1   :  { %v226_v57 = vadd.f32 %v225_v56, %v174_v55  ;;  %v398_v58 = vpop.f32.mrb[1].mxu0 }
 0x1d2   :  { %v228_v59 = vpop.f32.mrb[2].mxu0 }
 0x1d3   :  { %v371_v60 = vmul.f32 -1.442695, %v226_v57  ;;  %v399_v61 = vpop.f32.mrb[3].mxu0 }
 0x1d5   :  { %453 = vpow2.f32 %v371_v60 }
 0x1df   :  { %v454_v62 = vpop.eup %453 }
 0x1e0   :  { %v234_v63 = vadd.f32 1.0, %v454_v62 }
 0x1e2   :  { %455 = vrcp.f32 %v234_v63 }
 0x1ec   :  { %v456_v0 = vpop.eup %455 }
 0x1ed   :  { %v237_v1 = vmul.f32 %v456_v0, %v226_v57 }
 0x1ef   :  { %v238_v2 = vpack.c.bf16 %v237_v1, %v237_v1 }
 0x1f1   :  { %417 = vmatmul.mubr.bf16.vlgmr.msra.gmra.mrb[0].mxu1 %v238_v2 }
 0x2c4   :  { %v341_v5 = vpop.f32.mrb[0].mxu1 }
 0x2c5   :  { %v342_v7 = vadd.f32 %v341_v5, %v258_v4  ;;  %v418_v9 = vpop.f32.mrb[1].mxu1 }
 0x2c6   :  { %v344_v10 = vpop.f32.mrb[2].mxu1 }
 0x2c7   :  { %347 = vst [vmem:[#allocation7] sm:$0xff] %v342_v7  ;;  %v419_v11 = vpop.f32.mrb[3].mxu1 }
 0x2c8   :  { %512 = shalt.err (!%p509_p6)
}
 0x2c9   :  { %s513_s22 = scalar_lea.hbm %s669_s4, 128 }
 0x2ca   :  { %p514_p7 = scmp.ne.s32.totalorder %s669_s4, %s513_s22  ;;  %p517_p8 = scmp.lt.u32.totalorder %s513_s22, %s669_s4 }
 0x2cc   :  { %p519_p9 = pnand %p517_p8, %p514_p7 }
 0x2ce   :  { %522 = shalt.err (!%p519_p9)
}
 0x2cf   :  { %357 = dma.vmem_to_hbm [thread:$0]  %s355_s2, 128, %s669_s4, [#allocation4]  }
 0x2d0   :  { %527 = dma.done.wait [#allocation4], 128  }
 0x2d1   :  { %528 = vsyncadd [#allocation4], 4294967168 }
 0x2d2   :  { %361 = vsyncpa [#allocation3], 1 }
 0x2d3   :  { %362 = vsyncpa [#allocation6], 1 }
 0x2d4   :  { %363 = vsyncpa [#allocation4], 1 }

</bundles_post_ra>
